<compile_context>
chip_gen: v7x
topology: tpu7x:2x2x1
jax: 0.10.0
libtpu: 0.0.40
codegen_flags: <defaults>
</compile_context>

<pallas_src>
import functools

import jax
import jax.numpy as jnp
from jax.experimental import pallas as pl
from jax.experimental.pallas import tpu as pltpu

ALPHA = 0.8
GAMMA = 2.0
LANE = 128                 # lane width (last dim)
MAX_ROW_BLOCK = 8192       # 4 MiB f32 per input per block
MIN_SPLIT_ROWS = 64        # above this, force >= 2 blocks (dual-TC on v7x)
VMEM_LIMIT_BYTES = 32 * 1024 * 1024


def _round_up(n, m):
    return ((n + m - 1) // m) * m


def _sublane_align(dtype):
    # min second-to-last tile dim: f32 -> 8, bf16 -> 16, int8/bool -> 32
    return max(8, 32 // jnp.dtype(dtype).itemsize)


def _focal_weight(d, gamma):
    """(1 - p_t) ** gamma with small-integer gamma specialized (no pow)."""
    g = float(gamma)
    if g == 0.0:
        return jnp.ones_like(d)
    if g == 1.0:
        return d
    if g == 2.0:
        return d * d
    if g == 3.0:
        return d * d * d
    if g == 4.0:
        d2 = d * d
        return d2 * d2
    # TODO(synk): general float gamma falls back to pow (exp/log path); can
    # NaN for negative (1 - p_t) -- same hazard as the PyTorch module.
    return jnp.power(d, jnp.float32(g))


def _elementwise_loss(x, t, alpha, gamma):
    """Per-element focal loss, matching the PyTorch module (p = raw inputs)."""
    x = x.astype(jnp.float32)
    t = t.astype(jnp.float32)
    xt = x * t
    # binary_cross_entropy_with_logits, reduction='none' (stable form):
    # max(x,0) - x*t + log(1 + exp(-|x|))
    ce = jnp.maximum(x, 0.0) - xt + jnp.log1p(jnp.exp(-jnp.abs(x)))
    # 1 - p_t = 1 - (x*t + (1-x)*(1-t)) = x + t - 2*x*t
    d = x + t - 2.0 * xt
    loss = ce * _focal_weight(d, gamma)
    if alpha >= 0:
        # alpha_t = alpha*t + (1-alpha)*(1-t) = (1-alpha) + (2*alpha-1)*t
        alpha_t = (1.0 - alpha) + (2.0 * alpha - 1.0) * t
        loss = alpha_t * loss
    return loss


def _focal_loss_kernel(x_ref, t_ref, out_ref, *, alpha, gamma, row_block,
                       valid_rows_last, needs_mask):
    loss = _elementwise_loss(x_ref[...], t_ref[...], alpha, gamma)

    def _reduce(v):
        # Vreg-wise partial reduction: (row_block, 128) -> (8, 128).
        # Tile-aligned reshape; the sum is pure elementwise VPU adds.
        return v.reshape(row_block // 8, 8, LANE).sum(axis=0)

    out_ref[0] = _reduce(loss)

    if needs_mask:
        # Only the last grid block has a ragged tail; recompute the masked
        # partial there and overwrite (mask cost off the hot path).
        @pl.when(pl.program_id(0) == pl.num_programs(0) - 1)
        def _():
            row_ids = jax.lax.broadcasted_iota(jnp.int32, loss.shape, 0)
            masked = jnp.where(row_ids < valid_rows_last, loss, 0.0)
            out_ref[0] = _reduce(masked)


def focal_loss(inputs, targets, alpha=ALPHA, gamma=GAMMA):
    """Pallas TPU focal loss. inputs/targets: any shape (e.g. NCHW), same shape."""
    assert inputs.shape == targets.shape
    total = inputs.size

    x = inputs.reshape(-1)
    t = targets.reshape(-1)

    rows = total // LANE          # full 128-wide rows
    main = rows * LANE
    rem = total - main            # < 128 leftover elements

    total_sum = jnp.float32(0.0)

    if rows > 0:
        x2d = x[:main].reshape(rows, LANE)
        t2d = t[:main].reshape(rows, LANE)

        align = max(_sublane_align(inputs.dtype), _sublane_align(targets.dtype))
        row_block = min(MAX_ROW_BLOCK, _round_up(rows, align))
        if rows > MIN_SPLIT_ROWS:
            # Ensure >= 2 blocks for mid-sized inputs (v7x dual TensorCore).
            half = _round_up(-(-rows // 2), align)
            row_block = min(row_block, half)
        num_blocks = -(-rows // row_block)
        valid_rows_last = rows - (num_blocks - 1) * row_block
        needs_mask = valid_rows_last != row_block

        kernel = functools.partial(
            _focal_loss_kernel,
            alpha=alpha,
            gamma=gamma,
            row_block=row_block,
            valid_rows_last=valid_rows_last,
            needs_mask=needs_mask,
        )

        partials = pl.pallas_call(
            kernel,
            out_shape=jax.ShapeDtypeStruct((num_blocks, 8, LANE), jnp.float32),
            grid_spec=pltpu.PrefetchScalarGridSpec(
                num_scalar_prefetch=0,
                grid=(num_blocks,),
                in_specs=[
                    pl.BlockSpec((row_block, LANE), lambda i: (i, 0)),
                    pl.BlockSpec((row_block, LANE), lambda i: (i, 0)),
                ],
                out_specs=pl.BlockSpec((1, 8, LANE), lambda i: (i, 0, 0)),
            ),
            compiler_params=pltpu.CompilerParams(
                dimension_semantics=("parallel",),
                vmem_limit_bytes=VMEM_LIMIT_BYTES,
            ),
        )(x2d, t2d)
        total_sum = total_sum + jnp.sum(partials)

    if rem > 0:
        # Tiny (< 128 elem) ragged remainder handled in plain JAX -- cheaper
        # than padding/copying both full inputs in HBM.
        tail = _elementwise_loss(x[main:], t[main:], alpha, gamma)
        total_sum = total_sum + jnp.sum(tail)

    return total_sum / jnp.float32(total)


def focal_loss_ref(inputs, targets, alpha=ALPHA, gamma=GAMMA):
    """Pure-JAX reference matching the PyTorch module."""
    x = inputs.astype(jnp.float32)
    t = targets.astype(jnp.float32)
    ce = jnp.maximum(x, 0.0) - x * t + jnp.log1p(jnp.exp(-jnp.abs(x)))
    p_t = x * t + (1.0 - x) * (1.0 - t)
    loss = ce * (1.0 - p_t) ** gamma
    if alpha >= 0:
        alpha_t = alpha * t + (1.0 - alpha) * (1.0 - t)
        loss = alpha_t * loss
    return jnp.mean(loss)


if __name__ == "__main__":
    key = jax.random.PRNGKey(0)
    k1, k2 = jax.random.split(key)

    # Small NCHW-like shape: batch=2, channels=4, spatial=16x16 -> 2048 elems
    # (128-aligned, single block).
    shape = (2, 4, 16, 16)
    inputs = jax.random.normal(k1, shape, dtype=jnp.float32)
    targets = (jax.random.uniform(k2, shape) > 0.5).astype(jnp.float32)
    out = jax.block_until_ready(focal_loss(inputs, targets))
    ref = focal_loss_ref(inputs, targets)
    assert jnp.allclose(out, ref, rtol=1e-5, atol=1e-5), (out, ref)

    # Ragged shape: exercises the partial last block + in-JAX remainder path.
    shape2 = (2, 3, 15, 17)  # 1530 elements, not a multiple of 128
    x2 = jax.random.normal(k1, shape2, dtype=jnp.float32)
    t2 = (jax.random.uniform(k2, shape2) > 0.5).astype(jnp.float32)
    out2 = jax.block_until_ready(focal_loss(x2, t2))
    ref2 = focal_loss_ref(x2, t2)
    assert jnp.allclose(out2, ref2, rtol=1e-5, atol=1e-5), (out2, ref2)

    # Slightly larger shape: exercises the multi-block (parallel grid) path.
    shape3 = (4, 8, 32, 32)  # 32768 elements -> 2 blocks
    x3 = jax.random.normal(k1, shape3, dtype=jnp.float32)
    t3 = (jax.random.uniform(k2, shape3) > 0.5).astype(jnp.float32)
    out3 = jax.block_until_ready(focal_loss(x3, t3))
    ref3 = focal_loss_ref(x3, t3)
    assert jnp.allclose(out3, ref3, rtol=1e-5, atol=1e-5), (out3, ref3)

    print("KERNEL_OK")
</pallas_src>

<mosaic_0001>
module attributes {stable_mosaic.version = 11 : i64} {
  func.func @_focal_loss_kernel(%arg0: i32, %arg1: memref<16x128xf32, #tpu.memory_space<vmem>>, %arg2: memref<16x128xf32, #tpu.memory_space<vmem>>, %arg3: memref<1x8x128xf32, #tpu.memory_space<vmem>>) attributes {dimension_semantics = [#tpu.dimension_semantics<parallel>], iteration_bounds = array<i64: 1>, scalar_prefetch = 0 : i64, scratch_operands = 0 : i64, tpu.core_type = #tpu.core_type<tc>, window_params = [{transform_indices = @transform_0, window_bounds = array<i64: 16, 128>}, {transform_indices = @transform_1, window_bounds = array<i64: 16, 128>}, {transform_indices = @transform_2, window_bounds = array<i64: 1, 8, 128>}]} {
    %c0 = arith.constant 0 : index
    %c0_0 = arith.constant 0 : index
    %0 = vector.load %arg1[%c0, %c0_0] : memref<16x128xf32, #tpu.memory_space<vmem>>, vector<16x128xf32>
    %c0_1 = arith.constant 0 : index
    %c0_2 = arith.constant 0 : index
    %1 = vector.load %arg2[%c0_1, %c0_2] : memref<16x128xf32, #tpu.memory_space<vmem>>, vector<16x128xf32>
    %2 = arith.mulf %0, %1 : vector<16x128xf32>
    %cst = arith.constant 0.000000e+00 : f32
    %3 = vector.broadcast %cst : f32 to vector<16x128xf32>
    %4 = arith.maximumf %0, %3 : vector<16x128xf32>
    %5 = arith.subf %4, %2 : vector<16x128xf32>
    %6 = math.absf %0 : vector<16x128xf32>
    %cst_3 = arith.constant 0.000000e+00 : f32
    %7 = vector.broadcast %cst_3 : f32 to vector<16x128xf32>
    %8 = arith.subf %7, %6 : vector<16x128xf32>
    %9 = math.exp %8 : vector<16x128xf32>
    %10 = math.log1p %9 : vector<16x128xf32>
    %11 = arith.addf %5, %10 : vector<16x128xf32>
    %12 = arith.addf %0, %1 : vector<16x128xf32>
    %cst_4 = arith.constant 2.000000e+00 : f32
    %13 = vector.broadcast %cst_4 : f32 to vector<16x128xf32>
    %14 = arith.mulf %13, %2 : vector<16x128xf32>
    %15 = arith.subf %12, %14 : vector<16x128xf32>
    %16 = arith.mulf %15, %15 : vector<16x128xf32>
    %17 = arith.mulf %11, %16 : vector<16x128xf32>
    %cst_5 = arith.constant 6.000000e-01 : f32
    %18 = vector.broadcast %cst_5 : f32 to vector<16x128xf32>
    %19 = arith.mulf %18, %1 : vector<16x128xf32>
    %cst_6 = arith.constant 2.000000e-01 : f32
    %20 = vector.broadcast %cst_6 : f32 to vector<16x128xf32>
    %21 = arith.addf %20, %19 : vector<16x128xf32>
    %22 = arith.mulf %21, %17 : vector<16x128xf32>
    %23 = vector.shape_cast %22 : vector<16x128xf32> to vector<2x8x128xf32>
    %cst_7 = arith.constant dense<0.000000e+00> : vector<8x128xf32>
    %24 = vector.multi_reduction <add>, %23, %cst_7 [0] : vector<2x8x128xf32> to vector<8x128xf32>
    %c0_8 = arith.constant 0 : index
    %c0_9 = arith.constant 0 : index
    %c0_10 = arith.constant 0 : index
    %25 = vector.load %arg3[%c0_8, %c0_9, %c0_10] : memref<1x8x128xf32, #tpu.memory_space<vmem>>, vector<1x8x128xf32>
    %26 = vector.shape_cast %25 : vector<1x8x128xf32> to vector<8x128xf32>
    %27 = vector.shape_cast %24 : vector<8x128xf32> to vector<1x8x128xf32>
    tpu.vector_store %arg3[%c0_8, %c0_9, %c0_10], %27 {strides = array<i32>} : memref<1x8x128xf32, #tpu.memory_space<vmem>>, vector<1x8x128xf32>,
    return
  }
  func.func @transform_0(%arg0: i32) -> (i32, i32) {
    %c0_i32 = arith.constant 0 : i32
    %c0_i32_0 = arith.constant 0 : i32
    return %arg0, %c0_i32 : i32, i32
  }
  func.func @transform_1(%arg0: i32) -> (i32, i32) {
    %c0_i32 = arith.constant 0 : i32
    %c0_i32_0 = arith.constant 0 : i32
    return %arg0, %c0_i32 : i32, i32
  }
  func.func @transform_2(%arg0: i32) -> (i32, i32, i32) {
    %c0_i32 = arith.constant 0 : i32
    %c0_i32_0 = arith.constant 0 : i32
    %c0_i32_1 = arith.constant 0 : i32
    return %arg0, %c0_i32, %c0_i32_0 : i32, i32, i32
  }
}

</mosaic_0001>

<bundles_post_ra>
// kernel: tpu_custom_call.1
= control target key start
LH: loop header
LB: loop body
LE: loop exit
PB: predicated region body
PF: predicated region fallthrough
CT: control target
= control target key end

     0   :  { %7 = vsyncpa [#allocation3], 0  ;;  %s253_s0 = inlined_call_operand.hbm [shape: f32[16,128], index: 0, kind: input, shape index: {}]   ;;  %s254_s1 = inlined_call_operand.hbm [shape: f32[16,128], index: 1, kind: input, shape index: {}]   ;;  %s255_s2 = inlined_call_operand.hbm [shape: f32[1,8,128], index: 2, kind: output, shape index: {}]  }
   0x1   :  { %8 = vsyncpa [#allocation6], 0 }
   0x2   :  { %9 = vsyncpa [#allocation4], 0  ;;  %s197_s9 = smov [#allocation2]   ;;  %s125_s13 = scalar_lea.hbm %s253_s0, 256 }
   0x3   :  { %s15_s10 = sshll.u32 %s197_s9, 4  ;;  %p126_p0 = scmp.ne.s32.totalorder %s253_s0, %s125_s13  ;;  %s16_s10 = int_to_ptr.vmem [resolvable:$true] %s15_s10 }
   0x4   :  { %p129_p1 = scmp.lt.u32.totalorder %s125_s13, %s253_s0 }
   0x6   :  { %p131_p2 = pnand %p129_p1, %p126_p0 }
   0x8   :  { %134 = shalt.err (!%p131_p2)
}
   0x9   :  { %s135_s18 = scalar_lea.vmem %s16_s10, 256  ;;  %p140_p4 = scmp.lt.s32.totalorder %s16_s10, %s16_s10 }
   0xa   :  { %p136_p3 = scmp.ne.s32.totalorder %s16_s10, %s135_s18  ;;  %p141_p5 = scmp.lt.s32.totalorder %s135_s18, %s135_s18 }
   0xc   :  { %p142_p6 = por %p141_p5, %p140_p4 }
   0xe   :  { %p143_p7 = pnand %p142_p6, %p136_p3 }
  0x10   :  { %146 = shalt.err (!%p143_p7)
}
  0x11   :  { %s198_s19 = smov 128   ;;  %s199_s20 = smov 8  }
  0x12   :  { %21 = dma.hbm_to_vmem [thread:$0]  %s253_s0, 256, %s16_s10, [#allocation3], %s198_s19, %s198_s19, %s199_s20  }
  0x13   :  { %s200_s23 = smov [#allocation5]   ;;  %s147_s27 = scalar_lea.hbm %s254_s1, 256 }
  0x14   :  { %s27_s24 = sshll.u32 %s200_s23, 4  ;;  %p148_p8 = scmp.ne.s32.totalorder %s254_s1, %s147_s27  ;;  %s28_s24 = int_to_ptr.vmem [resolvable:$true] %s27_s24 }
  0x15   :  { %p151_p9 = scmp.lt.u32.totalorder %s147_s27, %s254_s1 }
  0x17   :  { %p153_p10 = pnand %p151_p9, %p148_p8 }
  0x19   :  { %156 = shalt.err (!%p153_p10)
}
  0x1a   :  { %s157_s4 = scalar_lea.vmem %s28_s24, 256  ;;  %p162_p12 = scmp.lt.s32.totalorder %s28_s24, %s28_s24 }
  0x1b   :  { %p158_p11 = scmp.ne.s32.totalorder %s28_s24, %s157_s4  ;;  %p163_p13 = scmp.lt.s32.totalorder %s157_s4, %s157_s4 }
  0x1d   :  { %p164_p0 = por %p163_p13, %p162_p12 }
  0x1f   :  { %p165_p1 = pnand %p164_p0, %p158_p11 }
  0x21   :  { %168 = shalt.err (!%p165_p1)
}
  0x22   :  { %33 = dma.hbm_to_vmem [thread:$0]  %s254_s1, 256, %s28_s24, [#allocation6], %s198_s19, %s198_s19, %s199_s20  }
  0x23   :  { %191 = dma.done.wait [#allocation3], 256  }
  0x24   :  { %192 = vsyncadd [#allocation3], 4294967040 }
  0x25   :  { %193 = dma.done.wait [#allocation6], 256  }
  0x26   :  { %194 = vsyncadd [#allocation6], 4294967040  ;;  %v40_v0 = vld [vmem:[#allocation2] sm:$0xff]  ;;  %v41_v1 = vld [vmem:[#allocation2 + $0x8] sm:$0xff]  ;;  %s201_s1 = smov [#allocation7]  }
  0x27   :  { %v50_v2 = vand.u32 2147483647, %v40_v0  ;;  %v51_v3 = vand.u32 2147483647, %v41_v1  ;;  %v42_v9 = vld [vmem:[#allocation5] sm:$0xff]  ;;  %v43_v11 = vld [vmem:[#allocation5 + $0x8] sm:$0xff] }
  0x28   :  { %v44_v14 = vmul.f32 %v42_v9, %v40_v0  ;;  %v45_v15 = vmul.f32 %v43_v11, %v41_v1  ;;  %v78_v18 = vadd.f32 %v42_v9, %v40_v0  ;;  %v79_v21 = vadd.f32 %v43_v11, %v41_v1  ;;  %s102_s6 = sshll.u32 %s201_s1, 4  ;;  %s103_s6 = int_to_ptr.vmem [resolvable:$true] %s102_s6 }
  0x29   :  { %v52_v4 = vsub.f32 0.0, %v50_v2  ;;  %v53_v5 = vsub.f32 0.0, %v51_v3  ;;  %v46_v23 = vmax.f32 %v40_v0, 0.0  ;;  %v47_v26 = vmax.f32 %v41_v1, 0.0  ;;  %s169_s7 = scalar_lea.vmem %s103_s6, 128  ;;  %p174_p3 = scmp.lt.s32.totalorder %s103_s6, %s103_s6 }
  0x2a   :  { %v80_v19 = vmul.f32 2.0, %v44_v14  ;;  %v81_v22 = vmul.f32 2.0, %v45_v15  ;;  %v88_v34 = vmul.f32 0.6, %v42_v9  ;;  %v89_v38 = vmul.f32 0.6, %v43_v11  ;;  %p170_p2 = scmp.ne.s32.totalorder %s103_s6, %s169_s7  ;;  %p175_p4 = scmp.lt.s32.totalorder %s169_s7, %s169_s7 }
  0x2b   :  { %v54_v6 = vmul.f32 1.442695, %v52_v4  ;;  %v56_v7 = vmul.f32 1.442695, %v53_v5  ;;  %v48_v32 = vsub.f32 %v46_v23, %v44_v14  ;;  %v49_v36 = vsub.f32 %v47_v26, %v45_v15 }
  0x2c   :  { %v82_v28 = vsub.f32 %v78_v18, %v80_v19  ;;  %v83_v30 = vsub.f32 %v79_v21, %v81_v22  ;;  %v90_v45 = vadd.f32 0.2, %v88_v34  ;;  %v91_v47 = vadd.f32 0.2, %v89_v38  ;;  %p176_p5 = por %p175_p4, %p174_p3 }
  0x2d   :  { %117 = vpow2.f32 %v54_v6 }
  0x2e   :  { %119 = vpow2.f32 %v56_v7  ;;  %v84_v40 = vmul.f32 %v82_v28, %v82_v28  ;;  %v85_v42 = vmul.f32 %v83_v30, %v83_v30  ;;  %p177_p6 = pnand %p176_p5, %p170_p2 }
  0x37   :  { %v118_v8 = vpop.eup %117 }
  0x38   :  { %v120_v10 = vpop.eup %119  ;;  %v58_v12 = vadd.f32 1.0, %v118_v8  ;;  %v61_v16 = vmul.f32 -0.5, %v118_v8  ;;  %v64_v24 = vand.u32 2147483647, %v118_v8 }
  0x39   :  { %v67_v13 = vadd.f32 1.0, %v120_v10  ;;  %v70_v17 = vmul.f32 -0.5, %v120_v10  ;;  %v73_v27 = vand.u32 2147483647, %v120_v10 }
  0x3a   :  { %121 = vlog2.f32 %v58_v12  ;;  %v62_v20 = vadd.f32 1.0, %v61_v16  ;;  %vm65_vm0 = vcmp.lt.f32.partialorder %v64_v24, 0.0004427343 }
  0x3b   :  { %123 = vlog2.f32 %v67_v13  ;;  %v71_v25 = vadd.f32 1.0, %v70_v17  ;;  %vm74_vm1 = vcmp.lt.f32.partialorder %v73_v27, 0.0004427343 }
  0x3c   :  { %v63_v29 = vmul.f32 %v118_v8, %v62_v20 }
  0x3d   :  { %v72_v33 = vmul.f32 %v120_v10, %v71_v25 }
  0x44   :  { %v122_v31 = vpop.eup %121 }
  0x45   :  { %v124_v35 = vpop.eup %123  ;;  %v60_v37 = vmul.f32 0.6931472, %v122_v31 }
  0x46   :  { %v69_v39 = vmul.f32 0.6931472, %v124_v35 }
  0x47   :  { %v66_v41 = vsel %vm65_vm0, %v63_v29, %v60_v37 }
  0x48   :  { %v75_v43 = vsel %vm74_vm1, %v72_v33, %v69_v39  ;;  %v76_v44 = vadd.f32 %v66_v41, %v48_v32 }
  0x49   :  { %v77_v46 = vadd.f32 %v75_v43, %v49_v36 }
  0x4a   :  { %v86_v48 = vmul.f32 %v84_v40, %v76_v44 }
  0x4b   :  { %v87_v49 = vmul.f32 %v85_v42, %v77_v46 }
  0x4c   :  { %v92_v50 = vmul.f32 %v90_v45, %v86_v48 }
  0x4d   :  { %v93_v51 = vmul.f32 %v91_v47, %v87_v49 }
  0x4f   :  { %v94_v52 = vadd.f32 %v93_v51, %v92_v50 }
  0x51   :  { %95 = vst [vmem:[#allocation7] sm:$0xff] %v94_v52 }
  0x52   :  { %180 = shalt.err (!%p177_p6)
}
  0x53   :  { %s181_s10 = scalar_lea.hbm %s255_s2, 128 }
  0x54   :  { %p182_p7 = scmp.ne.s32.totalorder %s255_s2, %s181_s10  ;;  %p185_p8 = scmp.lt.u32.totalorder %s181_s10, %s255_s2 }
  0x56   :  { %p187_p9 = pnand %p185_p8, %p182_p7 }
  0x58   :  { %190 = shalt.err (!%p187_p9)
}
  0x59   :  { %105 = dma.vmem_to_hbm [thread:$0]  %s103_s6, 128, %s255_s2, [#allocation4]  }
  0x5a   :  { %195 = dma.done.wait [#allocation4], 128  }
  0x5b   :  { %196 = vsyncadd [#allocation4], 4294967168 }
  0x5c   :  { %109 = vsyncpa [#allocation3], 1 }
  0x5d   :  { %110 = vsyncpa [#allocation6], 1 }
  0x5e   :  { %111 = vsyncpa [#allocation4], 1 }

</bundles_post_ra>
